<compile_context>
chip_gen: v5e
topology: v5e:2x2
jax: 0.10.0
libtpu: 0.0.40
codegen_flags: <defaults>
</compile_context>

<pallas_src>
import functools

import jax
import jax.numpy as jnp
from jax.experimental import pallas as pl
from jax.experimental.pallas import tpu as pltpu


def mlp_kernel(x_ref,
               w0_ref, b0_ref,
               w1_ref, b1_ref,
               w2_ref, b2_ref,
               w3_ref, b3_ref,
               o_ref):
    # x_ref is already bf16 (cast once in the wrapper) -> feed the MXU directly.
    # All matmuls: bf16 inputs, f32 accumulation. Elementwise work stays f32.

    # hidden layer 0: ReLU(x @ W0 + b0)
    h = jnp.dot(x_ref[...], w0_ref[...],
                preferred_element_type=jnp.float32) + b0_ref[...]
    h = jnp.maximum(h, 0.0)

    # hidden layer 1: ReLU(h @ W1 + b1)
    h = jnp.dot(h.astype(jnp.bfloat16), w1_ref[...],
                preferred_element_type=jnp.float32) + b1_ref[...]
    h = jnp.maximum(h, 0.0)

    # hidden layer 2: ReLU(h @ W2 + b2)
    h = jnp.dot(h.astype(jnp.bfloat16), w2_ref[...],
                preferred_element_type=jnp.float32) + b2_ref[...]
    h = jnp.maximum(h, 0.0)

    # output layer: sigmoid(h @ W3p + b3p)   (W3/b3 zero-padded to 128 lanes)
    z = jnp.dot(h.astype(jnp.bfloat16), w3_ref[...],
                preferred_element_type=jnp.float32) + b3_ref[...]
    o_ref[...] = jax.nn.sigmoid(z).astype(o_ref.dtype)


@functools.partial(jax.jit, static_argnames=("tile_b",))
def nnet_forward(x, params, *, tile_b=512):
    """x: (B, n_in) float32. params: list of (W, b) with W stored as (in, out)."""
    B, n_in = x.shape
    n_out = params[-1][0].shape[1]
    # Lane-dense output slab: pad the final layer's output dim up to 128.
    n_out_pad = max(128, ((n_out + 127) // 128) * 128)

    (w0, b0), (w1, b1), (w2, b2), (w3, b3) = params

    # Zero-pad the last layer to the lane-dense width (sliced off after the call).
    w3p = jnp.zeros((w3.shape[0], n_out_pad), w3.dtype).at[:, :n_out].set(w3)
    b3p = jnp.zeros((n_out_pad,), b3.dtype).at[:n_out].set(b3)

    # bf16 MXU operands (cast in the wrapper so the HBM copies are bf16 too).
    xk = x.astype(jnp.bfloat16)
    w0k = w0.astype(jnp.bfloat16)
    w1k = w1.astype(jnp.bfloat16)
    w2k = w2.astype(jnp.bfloat16)
    w3k = w3p.astype(jnp.bfloat16)

    # Biases stay f32 as (1, out) rows so they broadcast over the batch tile.
    b0r = b0.reshape(1, -1).astype(jnp.float32)
    b1r = b1.reshape(1, -1).astype(jnp.float32)
    b2r = b2.reshape(1, -1).astype(jnp.float32)
    b3r = b3p.reshape(1, -1).astype(jnp.float32)

    # Cap the batch tile so the grid has many steps (pipelining + megacore);
    # keep it a multiple of 8 unless it covers the whole (small) batch.
    tile_b = min(tile_b, B)
    if tile_b != B:
        tile_b = max(8, (tile_b // 8) * 8)
    grid = (pl.cdiv(B, tile_b),)

    def resident(shape):
        # Constant block index across the grid -> weights/biases stay VMEM-resident.
        return pl.BlockSpec(shape, lambda i: (0, 0))

    out_padded = pl.pallas_call(
        mlp_kernel,
        out_shape=jax.ShapeDtypeStruct((B, n_out_pad), jnp.float32),
        grid_spec=pltpu.PrefetchScalarGridSpec(
            num_scalar_prefetch=0,
            grid=grid,
            in_specs=[
                pl.BlockSpec((tile_b, n_in), lambda i: (i, 0)),
                resident(w0k.shape), resident(b0r.shape),
                resident(w1k.shape), resident(b1r.shape),
                resident(w2k.shape), resident(b2r.shape),
                resident(w3k.shape), resident(b3r.shape),
            ],
            out_specs=pl.BlockSpec((tile_b, n_out_pad), lambda i: (i, 0)),
        ),
        compiler_params=pltpu.CompilerParams(
            dimension_semantics=("parallel",),
        ),
    )(xk, w0k, b0r, w1k, b1r, w2k, b2r, w3k, b3r)

    # Slice off the real output columns (padding holds sigmoid(0)=0.5, discarded).
    return out_padded[:, :n_out]


def init_params(key, n_in, n_out, hlayers=(128, 256, 128)):
    """Deterministic synthetic init matching the PyTorch layer shapes.

    Mirrors nn.Linear's U(-1/sqrt(fan_in), 1/sqrt(fan_in)) init; weights stored
    as (in_features, out_features) so the kernel computes y = x @ W + b.
    """
    dims = [n_in] + list(hlayers) + [n_out]
    params = []
    for li in range(len(dims) - 1):
        fan_in, fan_out = dims[li], dims[li + 1]
        key, kw, kb = jax.random.split(key, 3)
        bound = 1.0 / (fan_in ** 0.5)
        w = jax.random.uniform(kw, (fan_in, fan_out), jnp.float32, -bound, bound)
        b = jax.random.uniform(kb, (fan_out,), jnp.float32, -bound, bound)
        params.append((w, b))
    return params


def nnet_reference_bf16(x, params):
    """Reference with the same bf16-operand / f32-accumulate matmul scheme."""
    h = x.astype(jnp.bfloat16)
    for (w, b) in params[:-1]:
        z = jnp.dot(h, w.astype(jnp.bfloat16),
                    preferred_element_type=jnp.float32) + b
        h = jnp.maximum(z, 0.0).astype(jnp.bfloat16)
    w, b = params[-1]
    z = jnp.dot(h, w.astype(jnp.bfloat16),
                preferred_element_type=jnp.float32) + b
    return jax.nn.sigmoid(z)


def nnet_reference_f32(x, params):
    h = x
    for (w, b) in params[:-1]:
        h = jnp.maximum(h @ w + b, 0.0)
    w, b = params[-1]
    return jax.nn.sigmoid(h @ w + b)


if __name__ == "__main__":
    key = jax.random.PRNGKey(0)
    n_in, n_out = 32, 16
    batch = 64       # small demo batch; tile_b=16 -> grid=(4,) exercises pipelining

    key, kx = jax.random.split(key)
    x = jax.random.normal(kx, (batch, n_in), jnp.float32)

    params = init_params(key, n_in, n_out)

    out = nnet_forward(x, params, tile_b=16)
    out = jax.block_until_ready(out)
    assert out.shape == (batch, n_out)

    # Tight check vs. a reference using the same bf16-MXU / f32-accumulate math.
    ref_bf16 = nnet_reference_bf16(x, params)
    assert jnp.allclose(out, ref_bf16, atol=1e-4, rtol=1e-4), (
        float(jnp.max(jnp.abs(out - ref_bf16))))

    # Loose sanity check vs. pure-f32 math (bf16 quantization error only).
    ref_f32 = nnet_reference_f32(x, params)
    assert jnp.allclose(out, ref_f32, atol=2e-2, rtol=2e-2), (
        float(jnp.max(jnp.abs(out - ref_f32))))

    print("KERNEL_OK")
</pallas_src>

<mosaic_0001>
module attributes {stable_mosaic.version = 11 : i64} {
  func.func @mlp_kernel(%arg0: i32, %arg1: memref<16x32xbf16, #tpu.memory_space<vmem>>, %arg2: memref<32x128xbf16, #tpu.memory_space<vmem>>, %arg3: memref<1x128xf32, #tpu.memory_space<vmem>>, %arg4: memref<128x256xbf16, #tpu.memory_space<vmem>>, %arg5: memref<1x256xf32, #tpu.memory_space<vmem>>, %arg6: memref<256x128xbf16, #tpu.memory_space<vmem>>, %arg7: memref<1x128xf32, #tpu.memory_space<vmem>>, %arg8: memref<128x128xbf16, #tpu.memory_space<vmem>>, %arg9: memref<1x128xf32, #tpu.memory_space<vmem>>, %arg10: memref<16x128xf32, #tpu.memory_space<vmem>>) attributes {dimension_semantics = [#tpu.dimension_semantics<parallel>], iteration_bounds = array<i64: 4>, scalar_prefetch = 0 : i64, scratch_operands = 0 : i64, tpu.core_type = #tpu.core_type<tc>, window_params = [{transform_indices = @transform_0, window_bounds = array<i64: 16, 32>}, {pipeline_mode = #tpu.pipeline_mode<synchronous>, transform_indices = @transform_1, window_bounds = array<i64: 32, 128>}, {pipeline_mode = #tpu.pipeline_mode<synchronous>, transform_indices = @transform_2, window_bounds = array<i64: 1, 128>}, {pipeline_mode = #tpu.pipeline_mode<synchronous>, transform_indices = @transform_3, window_bounds = array<i64: 128, 256>}, {pipeline_mode = #tpu.pipeline_mode<synchronous>, transform_indices = @transform_4, window_bounds = array<i64: 1, 256>}, {pipeline_mode = #tpu.pipeline_mode<synchronous>, transform_indices = @transform_5, window_bounds = array<i64: 256, 128>}, {pipeline_mode = #tpu.pipeline_mode<synchronous>, transform_indices = @transform_6, window_bounds = array<i64: 1, 128>}, {pipeline_mode = #tpu.pipeline_mode<synchronous>, transform_indices = @transform_7, window_bounds = array<i64: 128, 128>}, {pipeline_mode = #tpu.pipeline_mode<synchronous>, transform_indices = @transform_8, window_bounds = array<i64: 1, 128>}, {transform_indices = @transform_9, window_bounds = array<i64: 16, 128>}]} {
    %c0 = arith.constant 0 : index
    %c0_0 = arith.constant 0 : index
    %0 = vector.load %arg1[%c0, %c0_0] : memref<16x32xbf16, #tpu.memory_space<vmem>>, vector<16x32xbf16>
    %c0_1 = arith.constant 0 : index
    %c0_2 = arith.constant 0 : index
    %1 = vector.load %arg2[%c0_1, %c0_2] : memref<32x128xbf16, #tpu.memory_space<vmem>>, vector<32x128xbf16>
    %cst = arith.constant dense<0.000000e+00> : vector<16x128xf32>
    %2 = tpu.matmul %0, %1, %cst {dimension_numbers = #tpu.dot_dimension_numbers<[1], [0], [0], [1], [0, 0, 1, 1], [], []>} : vector<16x32xbf16>, vector<32x128xbf16>, vector<16x128xf32> -> vector<16x128xf32>
    %c0_3 = arith.constant 0 : index
    %c0_4 = arith.constant 0 : index
    %3 = vector.load %arg3[%c0_3, %c0_4] : memref<1x128xf32, #tpu.memory_space<vmem>>, vector<1x128xf32>
    %4 = vector.broadcast %3 : vector<1x128xf32> to vector<16x128xf32>
    %5 = arith.addf %2, %4 : vector<16x128xf32>
    %cst_5 = arith.constant 0.000000e+00 : f32
    %6 = vector.broadcast %cst_5 : f32 to vector<16x128xf32>
    %7 = arith.maximumf %5, %6 : vector<16x128xf32>
    %8 = arith.truncf %7 : vector<16x128xf32> to vector<16x128xbf16>
    %c0_6 = arith.constant 0 : index
    %c0_7 = arith.constant 0 : index
    %9 = vector.load %arg4[%c0_6, %c0_7] : memref<128x256xbf16, #tpu.memory_space<vmem>>, vector<128x256xbf16>
    %cst_8 = arith.constant dense<0.000000e+00> : vector<16x256xf32>
    %10 = tpu.matmul %8, %9, %cst_8 {dimension_numbers = #tpu.dot_dimension_numbers<[1], [0], [0], [1], [0, 0, 1, 1], [], []>} : vector<16x128xbf16>, vector<128x256xbf16>, vector<16x256xf32> -> vector<16x256xf32>
    %c0_9 = arith.constant 0 : index
    %c0_10 = arith.constant 0 : index
    %11 = vector.load %arg5[%c0_9, %c0_10] : memref<1x256xf32, #tpu.memory_space<vmem>>, vector<1x256xf32>
    %12 = vector.broadcast %11 : vector<1x256xf32> to vector<16x256xf32>
    %13 = arith.addf %10, %12 : vector<16x256xf32>
    %cst_11 = arith.constant 0.000000e+00 : f32
    %14 = vector.broadcast %cst_11 : f32 to vector<16x256xf32>
    %15 = arith.maximumf %13, %14 : vector<16x256xf32>
    %16 = arith.truncf %15 : vector<16x256xf32> to vector<16x256xbf16>
    %c0_12 = arith.constant 0 : index
    %c0_13 = arith.constant 0 : index
    %17 = vector.load %arg6[%c0_12, %c0_13] : memref<256x128xbf16, #tpu.memory_space<vmem>>, vector<256x128xbf16>
    %cst_14 = arith.constant dense<0.000000e+00> : vector<16x128xf32>
    %18 = tpu.matmul %16, %17, %cst_14 {dimension_numbers = #tpu.dot_dimension_numbers<[1], [0], [0], [1], [0, 0, 1, 1], [], []>} : vector<16x256xbf16>, vector<256x128xbf16>, vector<16x128xf32> -> vector<16x128xf32>
    %c0_15 = arith.constant 0 : index
    %c0_16 = arith.constant 0 : index
    %19 = vector.load %arg7[%c0_15, %c0_16] : memref<1x128xf32, #tpu.memory_space<vmem>>, vector<1x128xf32>
    %20 = vector.broadcast %19 : vector<1x128xf32> to vector<16x128xf32>
    %21 = arith.addf %18, %20 : vector<16x128xf32>
    %cst_17 = arith.constant 0.000000e+00 : f32
    %22 = vector.broadcast %cst_17 : f32 to vector<16x128xf32>
    %23 = arith.maximumf %21, %22 : vector<16x128xf32>
    %24 = arith.truncf %23 : vector<16x128xf32> to vector<16x128xbf16>
    %c0_18 = arith.constant 0 : index
    %c0_19 = arith.constant 0 : index
    %25 = vector.load %arg8[%c0_18, %c0_19] : memref<128x128xbf16, #tpu.memory_space<vmem>>, vector<128x128xbf16>
    %cst_20 = arith.constant dense<0.000000e+00> : vector<16x128xf32>
    %26 = tpu.matmul %24, %25, %cst_20 {dimension_numbers = #tpu.dot_dimension_numbers<[1], [0], [0], [1], [0, 0, 1, 1], [], []>} : vector<16x128xbf16>, vector<128x128xbf16>, vector<16x128xf32> -> vector<16x128xf32>
    %c0_21 = arith.constant 0 : index
    %c0_22 = arith.constant 0 : index
    %27 = vector.load %arg9[%c0_21, %c0_22] : memref<1x128xf32, #tpu.memory_space<vmem>>, vector<1x128xf32>
    %28 = vector.broadcast %27 : vector<1x128xf32> to vector<16x128xf32>
    %29 = arith.addf %26, %28 : vector<16x128xf32>
    %30 = arith.negf %29 : vector<16x128xf32>
    %31 = math.exp %30 : vector<16x128xf32>
    %cst_23 = arith.constant 1.000000e+00 : f32
    %32 = vector.broadcast %cst_23 : f32 to vector<16x128xf32>
    %33 = arith.addf %32, %31 : vector<16x128xf32>
    %34 = arith.divf %32, %33 : vector<16x128xf32>
    %c0_24 = arith.constant 0 : index
    %c0_25 = arith.constant 0 : index
    %35 = vector.load %arg10[%c0_24, %c0_25] : memref<16x128xf32, #tpu.memory_space<vmem>>, vector<16x128xf32>
    tpu.vector_store %arg10[%c0_24, %c0_25], %34 {strides = array<i32>} : memref<16x128xf32, #tpu.memory_space<vmem>>, vector<16x128xf32>,
    return
  }
  func.func @transform_0(%arg0: i32) -> (i32, i32) {
    %c0_i32 = arith.constant 0 : i32
    %c0_i32_0 = arith.constant 0 : i32
    return %arg0, %c0_i32 : i32, i32
  }
  func.func @transform_1(%arg0: i32) -> (i32, i32) {
    %c0_i32 = arith.constant 0 : i32
    %c0_i32_0 = arith.constant 0 : i32
    %c0_i32_1 = arith.constant 0 : i32
    return %c0_i32, %c0_i32_0 : i32, i32
  }
  func.func @transform_2(%arg0: i32) -> (i32, i32) {
    %c0_i32 = arith.constant 0 : i32
    %c0_i32_0 = arith.constant 0 : i32
    %c0_i32_1 = arith.constant 0 : i32
    return %c0_i32, %c0_i32_0 : i32, i32
  }
  func.func @transform_3(%arg0: i32) -> (i32, i32) {
    %c0_i32 = arith.constant 0 : i32
    %c0_i32_0 = arith.constant 0 : i32
    %c0_i32_1 = arith.constant 0 : i32
    return %c0_i32, %c0_i32_0 : i32, i32
  }
  func.func @transform_4(%arg0: i32) -> (i32, i32) {
    %c0_i32 = arith.constant 0 : i32
    %c0_i32_0 = arith.constant 0 : i32
    %c0_i32_1 = arith.constant 0 : i32
    return %c0_i32, %c0_i32_0 : i32, i32
  }
  func.func @transform_5(%arg0: i32) -> (i32, i32) {
    %c0_i32 = arith.constant 0 : i32
    %c0_i32_0 = arith.constant 0 : i32
    %c0_i32_1 = arith.constant 0 : i32
    return %c0_i32, %c0_i32_0 : i32, i32
  }
  func.func @transform_6(%arg0: i32) -> (i32, i32) {
    %c0_i32 = arith.constant 0 : i32
    %c0_i32_0 = arith.constant 0 : i32
    %c0_i32_1 = arith.constant 0 : i32
    return %c0_i32, %c0_i32_0 : i32, i32
  }
  func.func @transform_7(%arg0: i32) -> (i32, i32) {
    %c0_i32 = arith.constant 0 : i32
    %c0_i32_0 = arith.constant 0 : i32
    %c0_i32_1 = arith.constant 0 : i32
    return %c0_i32, %c0_i32_0 : i32, i32
  }
  func.func @transform_8(%arg0: i32) -> (i32, i32) {
    %c0_i32 = arith.constant 0 : i32
    %c0_i32_0 = arith.constant 0 : i32
    %c0_i32_1 = arith.constant 0 : i32
    return %c0_i32, %c0_i32_0 : i32, i32
  }
  func.func @transform_9(%arg0: i32) -> (i32, i32) {
    %c0_i32 = arith.constant 0 : i32
    %c0_i32_0 = arith.constant 0 : i32
    return %arg0, %c0_i32 : i32, i32
  }
}

</mosaic_0001>

<bundles_post_ra>
// kernel: nnet_forward.1
= control target key start
LH: loop header
LB: loop body
LE: loop exit
PB: predicated region body
PF: predicated region fallthrough
CT: control target
= control target key end

     0   :  { %s1168_s30 = smov 0   ;;  %s1375_s0 = inlined_call_operand.vmem [shape: bf16[64,32], index: 0, kind: input, shape index: {}]   ;;  %s1376_s1 = inlined_call_operand.vmem [shape: bf16[32,128], index: 1, kind: input, shape index: {}]   ;;  %s1377_s2 = inlined_call_operand.vmem [shape: f32[1,128], index: 2, kind: input, shape index: {}]   ;;  %s1378_s3 = inlined_call_operand.vmem [shape: bf16[128,256], index: 3, kind: input, shape index: {}]   ;;  %s1379_s4 = inlined_call_operand.vmem [shape: f32[1,256], index: 4, kind: input, shape index: {}]   ;;  %s1380_s5 = inlined_call_operand.vmem [shape: bf16[256,128], index: 5, kind: input, shape index: {}]   ;;  %s1381_s6 = inlined_call_operand.vmem [shape: f32[1,128], index: 6, kind: input, shape index: {}]   ;;  %s1382_s7 = inlined_call_operand.vmem [shape: bf16[128,128], index: 7, kind: input, shape index: {}]   ;;  %s1383_s8 = inlined_call_operand.vmem [shape: f32[1,128], index: 8, kind: input, shape index: {}]   ;;  %s1384_s9 = inlined_call_operand.vmem [shape: f32[64,128], index: 9, kind: output, shape index: {}]  }
   0x1 LB: > { %s862_s10 = sadd.s32 4294967295, %s1116_s30   ;;  %p866_p0 = scmp.ge.s32.totalorder %s1116_s30, 1  ;;  %s1116_s30 = sphi %s1168_s30, %s19_s30  }
   0x2   : > { %p288_p1 = scmp.lt.s32.totalorder %s1116_s30, 5 }
   0x4   : > { %p289_p2 = pnand %p866_p0, %p288_p1 }
   0x5   : > { %s867_s13 = sshll.u32 (!%p289_p2), %s862_s10, 1 }
   0x6   : > { %292 = sbr.rel (%p289_p2) target bundleno = 612 (0x264), region = 56  ;;  %p325_p3 = scmp.lt.s32.totalorder (!%p289_p2), %s867_s13, 7 }
   0xb   : > { %v1050_v0 = vld [vmem:[%s1376_s1 + $0x8] sm:$0xff]  ;;  %v942_v1 = vld [vmem:[%s1378_s3 + $0x70] sm:$0xf]  ;;  %v1049_v2 = vld [vmem:[%s1376_s1] sm:$0xff]  ;;  %s1386_s13 = smov (!%p325_p3, %s867_s13), 7  ;;  %vm364_vm0 = vcmask 261120  }
   0xc   : > { %v1066_v3 = vld [vmem:[%s1378_s3 + $0x74] sm:$0xf0]  ;;  %v1065_v4 = vld [vmem:[%s1378_s3 + $0x74] sm:$0xf]  ;;  %374 = vmatpush.bf16.msra.mxu0 %v1050_v0  ;;  %v944_v6 = vld [vmem:[%s1378_s3 + $0x78] sm:$0xf0] }
   0xd   : > { %v943_v5 = vor.u32 %v1066_v3, %v942_v1  ;;  %v934_v7 = vld [vmem:[%s1378_s3 + $0x60] sm:$0xf]  ;;  %v1064_v8 = vld [vmem:[%s1378_s3 + $0x64] sm:$0xf0]  ;;  %v947_v9 = vor.u32 %v1065_v4, %v944_v6  ;;  %v1063_v10 = vld [vmem:[%s1378_s3 + $0x64] sm:$0xf] }
   0xe   : > { %v936_v11 = vld [vmem:[%s1378_s3 + $0x68] sm:$0xf0]  ;;  %v935_v12 = vor.u32 %v1064_v8, %v934_v7  ;;  %s868_s12 = sshll.u32 %s1386_s13, 2  ;;  %v926_v14 = vld [vmem:[%s1378_s3 + $0x50] sm:$0xf]  ;;  %v1074_v51 = vld [vmem:[%s1380_s5 + $0x38] sm:$0xff] }
   0xf   : > { %487 = vmatpush.bf16.msra.mxu1 %v943_v5  ;;  %501 = vmatpush.bf16.msra.mxu2 %v947_v9  ;;  %v939_v13 = vor.u32 %v1063_v10, %v936_v11  ;;  %v1062_v15 = vld [vmem:[%s1378_s3 + $0x54] sm:$0xf0]  ;;  %s328_s20 = scalar_lea.vmem %s1375_s0, %s868_s12  ;;  %v1061_v16 = vld [vmem:[%s1378_s3 + $0x54] sm:$0xf]  ;;  %v928_v17 = vld [vmem:[%s1378_s3 + $0x58] sm:$0xf0] }
  0x10   : > { %375 = vmatpush.bf16.msra.mxu0 %v1049_v2  ;;  %v1048_v18 = vld [vmem:[%s328_s20] sm:$0xff]  ;;  %v927_v19 = vor.u32 %v1062_v15, %v926_v14  ;;  %v931_v20 = vor.u32 %v1061_v16, %v928_v17  ;;  %v1060_v22 = vld [vmem:[%s1378_s3 + $0x44] sm:$0xf0]  ;;  %v920_v24 = vld [vmem:[%s1378_s3 + $0x48] sm:$0xf0]  ;;  %653 = vmatpush.bf16.msra.mxu3 %v1074_v51  ;;  %s870_s26 = sshll.u32 %s1386_s13, 3 }
  0x11   : > { %v918_v21 = vld [vmem:[%s1378_s3 + $0x40] sm:$0xf]  ;;  %v1059_v23 = vld [vmem:[%s1378_s3 + $0x44] sm:$0xf]  ;;  %v910_v27 = vld [vmem:[%s1378_s3 + $0x30] sm:$0xf]  ;;  %s334_s29 = scalar_lea.vmem %s1384_s9, %s870_s26 }
  0x12   : > { %v919_v25 = vor.u32 %v1060_v22, %v918_v21  ;;  %v923_v26 = vor.u32 %v1059_v23, %v920_v24  ;;  %v1058_v28 = vld [vmem:[%s1378_s3 + $0x34] sm:$0xf0]  ;;  %v1057_v29 = vld [vmem:[%s1378_s3 + $0x34] sm:$0xf]  ;;  %v912_v31 = vld [vmem:[%s1378_s3 + $0x38] sm:$0xf0] }
  0x13   : > { %488 = vmatpush.bf16.msra.mxu1 %v935_v12  ;;  %883 = vmatmul.msk.bf16.vlgmr.msra.gmra.mxu0 %vm364_vm0, %v1048_v18  ;;  %v911_v30 = vor.u32 %v1058_v28, %v910_v27  ;;  %v915_v32 = vor.u32 %v1057_v29, %v912_v31  ;;  %v902_v33 = vld [vmem:[%s1378_s3 + $0x20] sm:$0xf]  ;;  %v1056_v34 = vld [vmem:[%s1378_s3 + $0x24] sm:$0xf0]  ;;  %v1055_v35 = vld [vmem:[%s1378_s3 + $0x24] sm:$0xf] }
  0x14   : > { %502 = vmatpush.bf16.msra.mxu2 %v939_v13  ;;  %v903_v36 = vor.u32 %v1056_v34, %v902_v33  ;;  %v904_v37 = vld [vmem:[%s1378_s3 + $0x28] sm:$0xf0]  ;;  %v894_v39 = vld [vmem:[%s1378_s3 + $0x10] sm:$0xf]  ;;  %v1054_v40 = vld [vmem:[%s1378_s3 + $0x14] sm:$0xf0] }
  0x15   : > { %v907_v38 = vor.u32 %v1055_v35, %v904_v37  ;;  %v1053_v41 = vld [vmem:[%s1378_s3 + $0x14] sm:$0xf]  ;;  %v895_v42 = vor.u32 %v1054_v40, %v894_v39  ;;  %v896_v43 = vld [vmem:[%s1378_s3 + $0x18] sm:$0xf0]  ;;  %v886_v45 = vld [vmem:[%s1378_s3] sm:$0xf] }
  0x16   : > { %v899_v44 = vor.u32 %v1053_v41, %v896_v43  ;;  %v1052_v46 = vld [vmem:[%s1378_s3 + $0x4] sm:$0xf0]  ;;  %v1051_v47 = vld [vmem:[%s1378_s3 + $0x4] sm:$0xf]  ;;  %v888_v49 = vld [vmem:[%s1378_s3 + $0x8] sm:$0xf0] }
  0x17   : > { %489 = vmatpush.bf16.msra.mxu1 %v927_v19  ;;  %v887_v48 = vor.u32 %v1052_v46, %v886_v45  ;;  %v891_v50 = vor.u32 %v1051_v47, %v888_v49  ;;  %v1082_v52 = vld [vmem:[%s1380_s5 + $0x78] sm:$0xff]  ;;  %v1073_v53 = vld [vmem:[%s1380_s5 + $0x30] sm:$0xff]  ;;  %v1072_v55 = vld [vmem:[%s1380_s5 + $0x28] sm:$0xff] }
  0x18   : > { %503 = vmatpush.bf16.msra.mxu2 %v931_v20  ;;  %667 = vmatpush.bf16.msrb.mxu0 %v1082_v52  ;;  %v1081_v54 = vld [vmem:[%s1380_s5 + $0x70] sm:$0xff]  ;;  %v1080_v56 = vld [vmem:[%s1380_s5 + $0x68] sm:$0xff]  ;;  %v1071_v57 = vld [vmem:[%s1380_s5 + $0x20] sm:$0xff] }
  0x19   : > { %654 = vmatpush.bf16.msra.mxu3 %v1073_v53  ;;  %v1099_v59 = vld [vmem:[%s1377_s2] ss:$0 sm:$0xff]  ;;  %v1070_v2 = vld [vmem:[%s1380_s5 + $0x18] sm:$0xff]  ;;  %v1069_v4 = vld [vmem:[%s1380_s5 + $0x10] sm:$0xff] }
  0x1a   : > { %v1079_v3 = vld [vmem:[%s1380_s5 + $0x60] sm:$0xff]  ;;  %v1078_v5 = vld [vmem:[%s1380_s5 + $0x58] sm:$0xff]  ;;  %v1068_v6 = vld [vmem:[%s1380_s5 + $0x8] sm:$0xff] }
  0x1b   : > { %490 = vmatpush.bf16.msra.mxu1 %v919_v25  ;;  %v1077_v7 = vld [vmem:[%s1380_s5 + $0x50] sm:$0xff]  ;;  %v1067_v8 = vld [vmem:[%s1380_s5] sm:$0xff]  ;;  %v1076_v9 = vld [vmem:[%s1380_s5 + $0x48] sm:$0xff] }
  0x1c   : > { %504 = vmatpush.bf16.msra.mxu2 %v923_v26  ;;  %668 = vmatpush.bf16.msrb.mxu0 %v1081_v54  ;;  %v1075_v10 = vld [vmem:[%s1380_s5 + $0x40] sm:$0xff]  ;;  %v1090_v11 = vld [vmem:[%s1382_s7 + $0x38] sm:$0xff]  ;;  %v1089_v12 = vld [vmem:[%s1382_s7 + $0x30] sm:$0xff] }
  0x1d   : > { %655 = vmatpush.bf16.msra.mxu3 %v1072_v55  ;;  %v1088_v13 = vld [vmem:[%s1382_s7 + $0x28] sm:$0xff]  ;;  %v1087_v14 = vld [vmem:[%s1382_s7 + $0x20] sm:$0xff]  ;;  %v1085_v33 = vld [vmem:[%s1382_s7 + $0x10] sm:$0xff] }
  0x1e   : > { %v401_v15 = vld [vmem:[%s1379_s4] sm:$0x3]  ;;  %v1084_v34 = vld [vmem:[%s1382_s7 + $0x8] sm:$0xff] }
  0x1f   : > { %491 = vmatpush.bf16.msra.mxu1 %v911_v30  ;;  %v403_v17 = vperm.slane %v401_v15, 0  ;;  %v404_v21 = vperm.slane %v401_v15, 1  ;;  %v1083_v35 = vld [vmem:[%s1382_s7] sm:$0xff] }
  0x20   : > { %505 = vmatpush.bf16.msra.mxu2 %v915_v32  ;;  %669 = vmatpush.bf16.msrb.mxu0 %v1080_v56  ;;  %v1086_v32 = vld [vmem:[%s1382_s7 + $0x18] sm:$0xff] }
  0x21   : > { %656 = vmatpush.bf16.msra.mxu3 %v1071_v57 }
  0x23   : > { %492 = vmatpush.bf16.msra.mxu1 %v903_v36 }
  0x24   : > { %506 = vmatpush.bf16.msra.mxu2 %v907_v38  ;;  %670 = vmatpush.bf16.msrb.mxu0 %v1079_v3  ;;  %v1100_v38 = vld [vmem:[%s1381_s6] ss:$0 sm:$0xff] }
  0x25   : > { %657 = vmatpush.bf16.msra.mxu3 %v1070_v2 }
  0x27   : > { %493 = vmatpush.bf16.msra.mxu1 %v895_v42 }
  0x28   : > { %507 = vmatpush.bf16.msra.mxu2 %v899_v44  ;;  %671 = vmatpush.bf16.msrb.mxu0 %v1078_v5 }
  0x29   : > { %658 = vmatpush.bf16.msra.mxu3 %v1069_v4 }
  0x2b   : > { %494 = vmatpush.bf16.msra.mxu1 %v887_v48  ;;  %v1101_v48 = vld [vmem:[%s1383_s8] ss:$0 sm:$0xff] }
  0x2c   : > { %508 = vmatpush.bf16.msra.mxu2 %v891_v50  ;;  %672 = vmatpush.bf16.msrb.mxu0 %v1077_v7 }
  0x2d   : > { %659 = vmatpush.bf16.msra.mxu3 %v1068_v6 }
  0x2f   : > { %752 = vmatpush.bf16.msrb.mxu1 %v1090_v11 }
  0x30   : > { %673 = vmatpush.bf16.msrb.mxu0 %v1076_v9 }
  0x31   : > { %660 = vmatpush.bf16.msra.mxu3 %v1067_v8 }
  0x33   : > { %753 = vmatpush.bf16.msrb.mxu1 %v1089_v12 }
  0x34   : > { %674 = vmatpush.bf16.msrb.mxu0 %v1075_v10 }
  0x37   : > { %754 = vmatpush.bf16.msrb.mxu1 %v1088_v13 }
  0x3b   : > { %755 = vmatpush.bf16.msrb.mxu1 %v1087_v14 }
  0x3f   : > { %756 = vmatpush.bf16.msrb.mxu1 %v1086_v32 }
  0x43   : > { %757 = vmatpush.bf16.msrb.mxu1 %v1085_v33 }
  0x47   : > { %758 = vmatpush.bf16.msrb.mxu1 %v1084_v34 }
  0x4b   : > { %759 = vmatpush.bf16.msrb.mxu1 %v1083_v35 }
  0x90   : > { %v377_v58 = vpop.f32.mrf.mxu0 }
  0x91   : > { %v378_v60 = vadd.f32 %v1099_v59, %v377_v58 }
  0x93   : > { %v382_v63 = vmax.f32 %v378_v60, 0.0 }
  0x98   : > { %v379_v61 = vpop.f32.mrf.mxu0 }
  0x99   : > { %v380_v62 = vadd.f32 %v1099_v59, %v379_v61 }
  0x9b   : > { %v383_v0 = vmax.f32 %v380_v62, 0.0 }
  0x9d   : > { %v384_v1 = vpack.c.bf16 %v383_v0, %v382_v63 }
  0x9f   : > { %495 = vmatmul.bf16.vlgmr.msra.gmra.mxu1 %v384_v1  ;;  %509 = vmatmul.bf16.vlgmr.msra.gmra.mxu2 %v384_v1 }
 0x11c   : > { %v496_v16 = vpop.f32.mrf.mxu1 }
 0x11d   : > { %v497_v19 = vadd.f32 %v496_v16, %v403_v17 }
 0x11f   : > { %v515_v23 = vmax.f32 %v497_v19, 0.0 }
 0x122   : > { %v510_v18 = vpop.f32.mrf.mxu2 }
 0x123   : > { %v511_v25 = vadd.f32 %v510_v18, %v404_v21 }
 0x124   : > { %v498_v20 = vpop.f32.mrf.mxu1 }
 0x125   : > { %v499_v22 = vadd.f32 %v498_v20, %v403_v17  ;;  %v516_v29 = vmax.f32 %v511_v25, 0.0 }
 0x127   : > { %v517_v24 = vmax.f32 %v499_v22, 0.0 }
 0x129   : > { %v519_v26 = vpack.c.bf16 %v517_v24, %v515_v23 }
 0x12a   : > { %v512_v27 = vpop.f32.mrf.mxu2 }
 0x12b   : > { %v513_v28 = vadd.f32 %v512_v27, %v404_v21  ;;  %661 = vmatmul.bf16.vlgmr.msra.gmra.mxu3 %v519_v26 }
 0x12d   : > { %v518_v30 = vmax.f32 %v513_v28, 0.0 }
 0x12f   : > { %v520_v31 = vpack.c.bf16 %v518_v30, %v516_v29 }
 0x131   : > { %675 = vmatmul.bf16.vlgmr.msrb.gmra.mxu0 %v520_v31 }
 0x1ae   : > { %v662_v36 = vpop.f32.mrf.mxu3  ;;  %v676_v37 = vpop.f32.mrf.mxu0 }
 0x1af   : > { %v663_v39 = vadd.f32 %v1100_v38, %v662_v36 }
 0x1b1   : > { %v677_v41 = vadd.f32 %v676_v37, %v663_v39 }
 0x1b3   : > { %v681_v45 = vmax.f32 %v677_v41, 0.0 }
 0x1b6   : > { %v664_v40 = vpop.f32.mrf.mxu3  ;;  %v678_v43 = vpop.f32.mrf.mxu0 }
 0x1b7   : > { %v665_v42 = vadd.f32 %v1100_v38, %v664_v40 }
 0x1b9   : > { %v679_v44 = vadd.f32 %v678_v43, %v665_v42 }
 0x1bb   : > { %v682_v46 = vmax.f32 %v679_v44, 0.0 }
 0x1bd   : > { %v683_v47 = vpack.c.bf16 %v682_v46, %v681_v45 }
 0x1bf   : > { %760 = vmatmul.bf16.vlgmr.msrb.gmra.mxu1 %v683_v47 }
 0x23c   : > { %v761_v49 = vpop.f32.mrf.mxu1 }
 0x23d   : > { %v762_v50 = vadd.f32 %v1101_v48, %v761_v49 }
 0x23f   : > { %v1044_v51 = vmul.f32 -1.442695, %v762_v50 }
 0x241   : > { %1102 = vpow2.f32 %v1044_v51 }
 0x244   : > { %v763_v52 = vpop.f32.mrf.mxu1 }
 0x245   : > { %v764_v53 = vadd.f32 %v1101_v48, %v763_v52 }
 0x247   : > { %v1103_v54 = vpop.eup %1102  ;;  %v1045_v55 = vmul.f32 -1.442695, %v764_v53 }
 0x248   : > { %v772_v56 = vadd.f32 1.0, %v1103_v54 }
 0x249   : > { %1104 = vpow2.f32 %v1045_v55 }
 0x24a   : > { %1106 = vrcp.f32 %v772_v56  ;;  %v785_v62 = vand.u32 2147483648, %v772_v56  ;;  %v783_v0 = vand.u32 2147483647, %v772_v56  ;;  %vm779_vm2 = vweird.f32 %v772_v56 }
 0x24c   : > { %v786_v3 = vor.u32 1.1754944e-38, %v785_v62  ;;  %vm784_vm4 = vcmp.eq.f32.partialorder %v783_v0, 8.507059e+37 }
 0x24f   : > { %v1105_v57 = vpop.eup %1104 }
 0x250   : > { %v1107_v58 = vpop.eup %1106  ;;  %v773_v59 = vadd.f32 1.0, %v1105_v57 }
 0x251   : > { %v775_v60 = vmul.f32 %v1107_v58, %v772_v56  ;;  %vm780_vm1 = vweird.f32 %v1107_v58 }
 0x252   : > { %1108 = vrcp.f32 %v773_v59  ;;  %vm781_vm3 = vmor %vm779_vm2, %vm780_vm1  ;;  %v800_v8 = vand.u32 2147483648, %v773_v59  ;;  %v798_v10 = vand.u32 2147483647, %v773_v59  ;;  %vm794_vm6 = vweird.f32 %v773_v59 }
 0x253   : > { %v776_v61 = vsub.f32 1.0, %v775_v60 }
 0x254   : > { %v801_v12 = vor.u32 1.1754944e-38, %v800_v8  ;;  %vm799_vm8 = vcmp.eq.f32.partialorder %v798_v10, 8.507059e+37 }
 0x255   : > { %v777_v63 = vmul.f32 %v1107_v58, %v776_v61 }
 0x257   : > { %v778_v1 = vadd.f32 %v1107_v58, %v777_v63 }
 0x258   : > { %v1109_v2 = vpop.eup %1108 }
 0x259   : > { %v782_v4 = vsel %vm781_vm3, %v1107_v58, %v778_v1  ;;  %v790_v5 = vmul.f32 %v1109_v2, %v773_v59  ;;  %vm795_vm5 = vweird.f32 %v1109_v2 }
 0x25a   : > { %v787_v6 = vsel %vm784_vm4, %v786_v3, %v782_v4  ;;  %vm796_vm7 = vmor %vm794_vm6, %vm795_vm5 }
 0x25b   : > { %804 = vst [vmem:[%s334_s29] sm:$0xff] %v787_v6  ;;  %v791_v7 = vsub.f32 1.0, %v790_v5 }
 0x25d   : > { %v792_v9 = vmul.f32 %v1109_v2, %v791_v7 }
 0x25f   : > { %v793_v11 = vadd.f32 %v1109_v2, %v792_v9 }
 0x261   : > { %v797_v13 = vsel %vm796_vm7, %v1109_v2, %v793_v11 }
 0x262   : > { %v802_v14 = vsel %vm799_vm8, %v801_v12, %v797_v13 }
 0x263   : > { %805 = vst [vmem:[%s334_s29 + $0x8] sm:$0xff] %v802_v14 }
 0x264 PF: > { %s19_s30 = sadd.s32 1, %s1116_s30  }
 0x265   : > { %p16_p4 = scmp.ge.s32.totalorder %s19_s30, 6  }
 0x267   :  { %18 = sbr.rel (!%p16_p4) target bundleno = 1 (0x1), region = 86 }

</bundles_post_ra>
